<compile_context>
chip_gen: v7x
topology: tpu7x:2x2x1
jax: 0.10.0
libtpu: 0.0.40
codegen_flags: <defaults>
</compile_context>

<pallas_src>
import functools

import jax
import jax.numpy as jnp
from jax.experimental import pallas as pl
from jax.experimental.pallas import tpu as pltpu


def _round_up(x, m):
    return ((x + m - 1) // m) * m


def _pick_tile(total, cap):
    """Largest 128-multiple divisor of `total` that is <= cap (or `total` itself)."""
    if total <= cap:
        return total
    for t in range(cap, 127, -128):
        if total % t == 0:
            return t
    return 128


# ---------------------------------------------------------------------------
# Kernels
# ---------------------------------------------------------------------------
def _linear_bias_kernel(x_ref, w_ref, b_ref, o_ref):
    # Single-K-tile fast path.
    # x_ref: [tm, K] bf16, w_ref: [K, tn] bf16, b_ref: [1, tn] f32, o_ref: [tm, tn]
    acc = jnp.dot(x_ref[...], w_ref[...], preferred_element_type=jnp.float32)
    o_ref[...] = (acc + b_ref[...]).astype(o_ref.dtype)


def _linear_acc_kernel(x_ref, w_ref, b_ref, o_ref, acc_ref):
    # Multi-K path with f32 scratch accumulator; K is the innermost grid axis.
    k = pl.program_id(2)

    @pl.when(k == 0)
    def _():
        # Fold the bias add into the accumulator init.
        acc_ref[...] = jnp.broadcast_to(b_ref[...], acc_ref.shape)

    acc_ref[...] += jnp.dot(
        x_ref[...], w_ref[...], preferred_element_type=jnp.float32
    )

    @pl.when(k == pl.num_programs(2) - 1)
    def _():
        o_ref[...] = acc_ref[...].astype(o_ref.dtype)


# ---------------------------------------------------------------------------
# Parameter setup (one time, NOT per forward call)
# ---------------------------------------------------------------------------
def prepare_params(weight, bias, compute_dtype=jnp.bfloat16):
    """weight: [OUT, IN] (PyTorch layout), bias: [OUT].

    Returns (w_t_padded [Kp, Np] in compute_dtype, bias_padded [1, Np] f32).
    Transpose + pad + cast happen once here, never inside the per-call path.
    """
    OUT, IN = weight.shape
    Kp = _round_up(IN, 128)
    Np = _round_up(OUT, 128)
    w_t = jnp.pad(weight.T, ((0, Kp - IN), (0, Np - OUT))).astype(compute_dtype)
    b = jnp.pad(bias.reshape(1, OUT), ((0, 0), (0, Np - OUT))).astype(jnp.float32)
    return w_t, b


# ---------------------------------------------------------------------------
# Forward
# ---------------------------------------------------------------------------
@functools.partial(jax.jit, static_argnames=("out_size",))
def linear_forward(x, w_t, b, out_size):
    """x: [B, IN] (any float dtype), w_t: [Kp, Np] (prepared), b: [1, Np] f32."""
    B, IN = x.shape
    Kp, Np = w_t.shape
    assert IN <= Kp and out_size <= Np
    compute_dtype = w_t.dtype
    out_dtype = x.dtype

    # --- tile selection -----------------------------------------------------
    # Stream the weight exactly once for small/medium batches (tm = whole
    # padded batch); otherwise fall back to 512-row tiles.
    Mp0 = _round_up(B, 8)
    if Mp0 <= 1024:
        tm, Mp = Mp0, Mp0
    else:
        tm = 512
        Mp = _round_up(B, tm)
    tn = _pick_tile(Np, 512)    # 256-multiple friendly for v6e/v7x MXU
    tk = _pick_tile(Kp, 1024)
    n_k = Kp // tk
    grid_m, grid_n = Mp // tm, Np // tn

    # --- per-call input prep (only x; W/bias were prepared once) -------------
    xp = x
    if Mp != B or Kp != IN:
        xp = jnp.pad(x, ((0, Mp - B), (0, Kp - IN)))
    xp = xp.astype(compute_dtype)

    # --- cost / VMEM accounting ----------------------------------------------
    c_item = jnp.dtype(compute_dtype).itemsize
    o_item = jnp.dtype(out_dtype).itemsize
    cost = pl.CostEstimate(
        flops=2 * Mp * Np * Kp,
        transcendentals=0,
        bytes_accessed=(
            grid_n * Mp * Kp * c_item       # x re-read once per N tile
            + grid_m * Np * Kp * c_item     # W re-read once per M tile
            + grid_m * Np * 4               # bias (f32)
            + Mp * Np * o_item              # output
        ),
    )
    footprint = (
        2 * (tm * tk * c_item + tk * tn * c_item + tn * 4)   # double-buffered inputs
        + 2 * tm * tn * o_item                                # double-buffered output
        + (tm * tn * 4 if n_k > 1 else 0)                     # f32 scratch
    )
    # Real footprint + generous margin, capped well below v7x's 64 MiB VMEM.
    vmem_limit = int(min(48 * 1024 * 1024, max(2 * footprint + (2 << 20), 16 << 20)))

    # --- pallas_call ----------------------------------------------------------
    if n_k == 1:
        out_padded = pl.pallas_call(
            _linear_bias_kernel,
            out_shape=jax.ShapeDtypeStruct((Mp, Np), out_dtype),
            grid_spec=pltpu.PrefetchScalarGridSpec(
                num_scalar_prefetch=0,
                grid=(grid_m, grid_n),
                in_specs=[
                    pl.BlockSpec((tm, tk), lambda i, j: (i, 0)),   # x
                    pl.BlockSpec((tk, tn), lambda i, j: (0, j)),   # W^T [IN, OUT]
                    pl.BlockSpec((1, tn), lambda i, j: (0, j)),    # bias
                ],
                out_specs=pl.BlockSpec((tm, tn), lambda i, j: (i, j)),
            ),
            compiler_params=pltpu.CompilerParams(
                dimension_semantics=("parallel", "parallel"),
                vmem_limit_bytes=vmem_limit,
            ),
            cost_estimate=cost,
        )(xp, w_t, b)
    else:
        out_padded = pl.pallas_call(
            _linear_acc_kernel,
            out_shape=jax.ShapeDtypeStruct((Mp, Np), out_dtype),
            grid_spec=pltpu.PrefetchScalarGridSpec(
                num_scalar_prefetch=0,
                grid=(grid_m, grid_n, n_k),
                in_specs=[
                    pl.BlockSpec((tm, tk), lambda i, j, k: (i, k)),  # x
                    pl.BlockSpec((tk, tn), lambda i, j, k: (k, j)),  # W^T [IN, OUT]
                    pl.BlockSpec((1, tn), lambda i, j, k: (0, j)),   # bias
                ],
                out_specs=pl.BlockSpec((tm, tn), lambda i, j, k: (i, j)),
                scratch_shapes=[pltpu.VMEM((tm, tn), jnp.float32)],
            ),
            compiler_params=pltpu.CompilerParams(
                dimension_semantics=("parallel", "parallel", "arbitrary"),
                vmem_limit_bytes=vmem_limit,
            ),
            cost_estimate=cost,
        )(xp, w_t, b)

    # Slice back to the logical (unpadded) output shape.
    return out_padded[:B, :out_size]


if __name__ == "__main__":
    # Small shapes consistent with LR(in_size, out_size): batch=4, in=32, out=8
    in_size, out_size, batch = 32, 8, 4

    key = jax.random.PRNGKey(0)
    kx, kw, kb = jax.random.split(key, 3)

    # Deterministic parameter init mimicking nn.Linear's U(-1/sqrt(in), 1/sqrt(in))
    bound = 1.0 / (in_size ** 0.5)
    weight = jax.random.uniform(kw, (out_size, in_size), jnp.float32, -bound, bound)
    bias = jax.random.uniform(kb, (out_size,), jnp.float32, -bound, bound)
    x = jax.random.normal(kx, (batch, in_size), jnp.float32)

    # One-time parameter re-layout (transpose + pad + bf16 cast).
    w_t, b_pad = prepare_params(weight, bias)

    out = linear_forward(x, w_t, b_pad, out_size)
    out = jax.block_until_ready(out)

    # Pure-JAX f32 reference (same semantics as torch nn.Linear forward).
    ref = x @ weight.T + bias
    assert out.shape == (batch, out_size)
    # bf16 operands with f32 accumulation -> loosened tolerance vs f32 ref.
    assert jnp.allclose(out, ref, atol=3e-2, rtol=3e-2), (out, ref)

    print("KERNEL_OK")
</pallas_src>

<mosaic_0001>
module attributes {stable_mosaic.version = 11 : i64} {
  func.func @_linear_bias_kernel(%arg0: i32, %arg1: i32, %arg2: memref<8x128xbf16, #tpu.memory_space<vmem>>, %arg3: memref<128x128xbf16, #tpu.memory_space<vmem>>, %arg4: memref<1x128xf32, #tpu.memory_space<vmem>>, %arg5: memref<8x128xf32, #tpu.memory_space<vmem>>) attributes {dimension_semantics = [#tpu.dimension_semantics<parallel>, #tpu.dimension_semantics<parallel>], iteration_bounds = array<i64: 1, 1>, scalar_prefetch = 0 : i64, scratch_operands = 0 : i64, tpu.core_type = #tpu.core_type<tc>, window_params = [{transform_indices = @transform_0, window_bounds = array<i64: 8, 128>}, {transform_indices = @transform_1, window_bounds = array<i64: 128, 128>}, {transform_indices = @transform_2, window_bounds = array<i64: 1, 128>}, {transform_indices = @transform_3, window_bounds = array<i64: 8, 128>}]} {
    %c0 = arith.constant 0 : index
    %c0_0 = arith.constant 0 : index
    %0 = vector.load %arg2[%c0, %c0_0] : memref<8x128xbf16, #tpu.memory_space<vmem>>, vector<8x128xbf16>
    %c0_1 = arith.constant 0 : index
    %c0_2 = arith.constant 0 : index
    %1 = vector.load %arg3[%c0_1, %c0_2] : memref<128x128xbf16, #tpu.memory_space<vmem>>, vector<128x128xbf16>
    %cst = arith.constant dense<0.000000e+00> : vector<8x128xf32>
    %2 = tpu.matmul %0, %1, %cst {dimension_numbers = #tpu.dot_dimension_numbers<[1], [0], [0], [1], [0, 0, 1, 1], [], []>} : vector<8x128xbf16>, vector<128x128xbf16>, vector<8x128xf32> -> vector<8x128xf32>
    %c0_3 = arith.constant 0 : index
    %c0_4 = arith.constant 0 : index
    %3 = vector.load %arg4[%c0_3, %c0_4] : memref<1x128xf32, #tpu.memory_space<vmem>>, vector<1x128xf32>
    %4 = vector.broadcast %3 : vector<1x128xf32> to vector<8x128xf32>
    %5 = arith.addf %2, %4 : vector<8x128xf32>
    %c0_5 = arith.constant 0 : index
    %c0_6 = arith.constant 0 : index
    %6 = vector.load %arg5[%c0_5, %c0_6] : memref<8x128xf32, #tpu.memory_space<vmem>>, vector<8x128xf32>
    tpu.vector_store %arg5[%c0_5, %c0_6], %5 {strides = array<i32>} : memref<8x128xf32, #tpu.memory_space<vmem>>, vector<8x128xf32>,
    return
  }
  func.func @transform_0(%arg0: i32, %arg1: i32) -> (i32, i32) {
    %c0_i32 = arith.constant 0 : i32
    %c0_i32_0 = arith.constant 0 : i32
    return %arg0, %c0_i32 : i32, i32
  }
  func.func @transform_1(%arg0: i32, %arg1: i32) -> (i32, i32) {
    %c0_i32 = arith.constant 0 : i32
    %c0_i32_0 = arith.constant 0 : i32
    return %c0_i32, %arg1 : i32, i32
  }
  func.func @transform_2(%arg0: i32, %arg1: i32) -> (i32, i32) {
    %c0_i32 = arith.constant 0 : i32
    %c0_i32_0 = arith.constant 0 : i32
    return %c0_i32, %arg1 : i32, i32
  }
  func.func @transform_3(%arg0: i32, %arg1: i32) -> (i32, i32) {
    %c0_i32 = arith.constant 0 : i32
    return %arg0, %arg1 : i32, i32
  }
}

</mosaic_0001>

<bundles_post_ra>
// kernel: linear_forward.1
= control target key start
LH: loop header
LB: loop body
LE: loop exit
PB: predicated region body
PF: predicated region fallthrough
CT: control target
= control target key end

     0   :  { %8 = vsyncpa [#allocation3], 0  ;;  %s222_s12 = smov [#allocation2]   ;;  %s268_s0 = inlined_call_operand.vmem [shape: bf16[8,128], index: 0, kind: input, shape index: {}]   ;;  %s269_s1 = inlined_call_operand.hbm [shape: bf16[128,128], index: 1, kind: input, shape index: {}]   ;;  %s270_s2 = inlined_call_operand.vmem [shape: f32[1,128], index: 2, kind: input, shape index: {}]   ;;  %s271_s3 = inlined_call_operand.vmem [shape: f32[8,128], index: 3, kind: output, shape index: {}]  }
   0x1   :  { %s16_s13 = sshll.u32 %s222_s12, 4  ;;  %s198_s16 = scalar_lea.hbm %s269_s1, 1024  ;;  %s17_s13 = int_to_ptr.vmem [resolvable:$true] %s16_s13 }
   0x2   :  { %p199_p0 = scmp.ne.s32.totalorder %s269_s1, %s198_s16  ;;  %p202_p1 = scmp.lt.u32.totalorder %s198_s16, %s269_s1 }
   0x4   :  { %p204_p2 = pnand %p202_p1, %p199_p0 }
   0x6   :  { %207 = shalt.err (!%p204_p2)
}
   0x7   :  { %s208_s21 = scalar_lea.vmem %s17_s13, 1024  ;;  %p213_p4 = scmp.lt.s32.totalorder %s17_s13, %s17_s13 }
   0x8   :  { %p209_p3 = scmp.ne.s32.totalorder %s17_s13, %s208_s21  ;;  %p214_p5 = scmp.lt.s32.totalorder %s208_s21, %s208_s21 }
   0xa   :  { %p215_p6 = por %p214_p5, %p213_p4 }
   0xc   :  { %p216_p7 = pnand %p215_p6, %p209_p3 }
   0xe   :  { %219 = shalt.err (!%p216_p7)
}
   0xf   :  { %s223_s22 = smov 64   ;;  %s224_s23 = smov 4  }
  0x10   :  { %22 = dma.hbm_to_vmem [thread:$0]  %s269_s1, 1024, %s17_s13, [#allocation3], %s223_s22, %s223_s22, %s224_s23  }
  0x11   :  { %220 = dma.done.wait [#allocation3], 1024  }
  0x12   :  { %221 = vsyncadd [#allocation3], 4294966272  ;;  %v225_v0 = vmov 0.0   ;;  %vm226_vm0 = vmmov 0   ;;  %v190_v1 = vld [vmem:[#allocation2] sm:$0xff]   ;;  %v191_v2 = vld [vmem:[#allocation2 + $0x8] sm:$0xff]  }
  0x13   :  { %165 = vmatprep.subr.bf16.mxu0 %v225_v0  ;;  %181 = vmatprep.mubr.msk.bf16.mxu0 %vm226_vm0, %v225_v0  ;;  %v192_v3 = vld [vmem:[#allocation2 + $0x10] sm:$0xff]   ;;  %v193_v4 = vld [vmem:[#allocation2 + $0x18] sm:$0xff]   ;;  %v194_v5 = vld [vmem:[#allocation2 + $0x20] sm:$0xff]  }
  0x14   :  { %166 = vmatpush3.bf16.msra.mxu0 %v190_v1  ;;  %v195_v6 = vld [vmem:[#allocation2 + $0x28] sm:$0xff]   ;;  %v196_v7 = vld [vmem:[#allocation2 + $0x30] sm:$0xff]   ;;  %v197_v8 = vld [vmem:[#allocation2 + $0x38] sm:$0xff]  }
  0x15   :  { %167 = vmatprep.subr.bf16.mxu0 %v225_v0  ;;  %v29_v9 = vld [vmem:[%s268_s0] sm:$0xf] }
  0x16   :  { %v147_v10 = vld [vmem:[%s270_s2] ss:$0 sm:$0xff] }
  0x18   :  { %168 = vmatpush3.bf16.msra.mxu0 %v191_v2 }
  0x19   :  { %169 = vmatprep.subr.bf16.mxu0 %v225_v0 }
  0x1c   :  { %170 = vmatpush3.bf16.msra.mxu0 %v192_v3 }
  0x1d   :  { %171 = vmatprep.subr.bf16.mxu0 %v225_v0 }
  0x20   :  { %172 = vmatpush3.bf16.msra.mxu0 %v193_v4 }
  0x21   :  { %173 = vmatprep.subr.bf16.mxu0 %v225_v0 }
  0x24   :  { %174 = vmatpush3.bf16.msra.mxu0 %v194_v5 }
  0x25   :  { %175 = vmatprep.subr.bf16.mxu0 %v225_v0 }
  0x28   :  { %176 = vmatpush3.bf16.msra.mxu0 %v195_v6 }
  0x29   :  { %177 = vmatprep.subr.bf16.mxu0 %v225_v0 }
  0x2c   :  { %178 = vmatpush3.bf16.msra.mxu0 %v196_v7 }
  0x2d   :  { %179 = vmatprep.subr.bf16.mxu0 %v225_v0 }
  0x30   :  { %180 = vmatpush3.bf16.msra.mxu0 %v197_v8 }
  0x33   :  { %182 = vmatmul.mubr.bf16.vlgmr.msra.gmra.mrb[0].mxu0 %v29_v9 }
 0x106   :  { %v135_v11 = vpop.f32.mrb[0].mxu0 }
 0x107   :  { %v136_v12 = vadd.f32 %v147_v10, %v135_v11  ;;  %v183_v13 = vpop.f32.mrb[1].mxu0 }
 0x108   :  { %v138_v14 = vpop.f32.mrb[2].mxu0 }
 0x109   :  { %141 = vst [vmem:[%s271_s3] sm:$0xff] %v136_v12  ;;  %v184_v15 = vpop.f32.mrb[3].mxu0 }
 0x10a   :  { %146 = vsyncpa [#allocation3], 1 }

</bundles_post_ra>
